<compile_context>
chip_gen: v7x
topology: tpu7x:2x2x1
jax: 0.10.0
libtpu: 0.0.40
codegen_flags: <defaults>
</compile_context>

<pallas_src>
import functools

import jax
import jax.numpy as jnp
import numpy as np
from jax import lax
from jax.experimental import pallas as pl
from jax.experimental.pallas import tpu as pltpu

K = 5                  # kernel_size
PAD = (K - 1) // 2     # = 2 ("padding=True" path of FilterLow)
HALO = 8               # rows kept above/below each strip (>= 2*PAD, 8-aligned)


def _tree_sum(terms):
    """Pairwise (tree) sum: short dependence chains for the 4-wide VALU."""
    terms = list(terms)
    while len(terms) > 1:
        nxt = [terms[i] + terms[i + 1] for i in range(0, len(terms) - 1, 2)]
        if len(terms) % 2:
            nxt.append(terms[-1])
        terms = nxt
    return terms[0]


def _filter_high_kernel(x_ref, halo_ref, o_ref, xw_ref, *, img_h):
    # x_ref    : (TH, W)          input strip (rows [g0, g0+TH) of one plane)
    # halo_ref : (2*HALO, W)      rows [g0-HALO, g0) and [g0+TH, g0+TH+HALO),
    #                             already zeroed where outside the image
    # o_ref    : (TH, W)          output strip
    # xw_ref   : (TH+2*HALO, W)   f32 assembly scratch (fully rewritten each step)
    TH, W = x_ref.shape
    R = TH + 2 * HALO
    g0 = pl.program_id(1) * TH          # global image row of first output row

    # ---- assemble the haloed strip (f32, zero outside the image) ----------
    main = x_ref[...].astype(jnp.float32)
    if img_h % TH != 0:
        # last (partial) strip: rows past the image are undefined -> zero them
        row_in = lax.broadcasted_iota(jnp.int32, (TH, W), 0)
        main = jnp.where(row_in + g0 < img_h, main, 0.0)
    xw_ref[0:HALO, :] = halo_ref[0:HALO, :].astype(jnp.float32)
    xw_ref[HALO:HALO + TH, :] = main
    xw_ref[HALO + TH:R, :] = halo_ref[HALO:2 * HALO, :].astype(jnp.float32)
    xw = xw_ref[...]

    # ---- edge masks along W (hoisted: shared by both box passes) ----------
    lane = lax.broadcasted_iota(jnp.int32, (R, W), 1)
    col_ok = {}
    for d in range(1, PAD + 1):
        col_ok[d] = lane < (W - d)       # source column w + d in range
        col_ok[-d] = lane >= d           # source column w - d in range

    def wsum(v):
        # 5-tap box sum along W: lane rolls (XLU) + edge masks, tree-summed.
        terms = [v]
        for d in range(1, PAD + 1):
            terms.append(jnp.where(col_ok[d], pltpu.roll(v, (W - d) % W, 1), 0.0))
            terms.append(jnp.where(col_ok[-d], pltpu.roll(v, d, 1), 0.0))
        return _tree_sum(terms)

    def hsum(v):
        # 5-tap box sum along H: sublane rolls.  Wrap-around only pollutes the
        # outermost halo rows, which never feed this strip's output rows.
        terms = [v]
        for d in range(1, PAD + 1):
            terms.append(pltpu.roll(v, (R - d) % R, 0))
            terms.append(pltpu.roll(v, d, 0))
        return _tree_sum(terms)

    s1 = hsum(wsum(xw))                                   # 25 * filter_low(x)

    # The second pool's zero padding applies at the *image* boundary: zero the
    # intermediate outside the image before pooling it again.
    row_g = lax.broadcasted_iota(jnp.int32, (R, W), 0) + (g0 - HALO)
    t1 = jnp.where((row_g >= 0) & (row_g < img_h), s1, 0.0)
    s2 = hsum(wsum(t1))                                    # 625 * filter_low(filter_low(x))

    # Folded normalisation: out = 0.5 + 0.5*(y - filter_low(y))
    c1 = jnp.float32(0.5 / (K * K))
    c2 = jnp.float32(0.5 / (K * K * K * K))
    out = jnp.float32(0.5) + c1 * s1 - c2 * s2
    o_ref[...] = out[HALO:HALO + TH, :].astype(o_ref.dtype)


def _pick_strip_height(H, W, itemsize):
    """Choose strip height TH from a per-generation VMEM budget."""
    try:
        vmem_phys = int(pltpu.get_tpu_info().vmem_capacity_bytes)
    except Exception:
        vmem_phys = 64 * 2 ** 20             # conservative: v7x per-TC VMEM
    budget = int(vmem_phys * 0.5)            # headroom for Mosaic internals
    # per extra row: double-buffered in+out blocks (input dtype) + assembly
    # scratch + ~8 live f32 temporaries inside the kernel body.
    per_row = W * (4 * itemsize + 9 * 4)
    max_rows = max(8, budget // per_row)
    th = max(8, min((max_rows // 8) * 8, 256))   # cap: shorter pipeline stages
    if th >= H:
        th = H                                   # whole height fits: one strip
    vmem_limit = int(min(vmem_phys * 0.85, 100 * 2 ** 20))
    return th, vmem_limit


def filter_high(x):
    """FilterHigh forward (module defaults) for x of shape (N, C, H, W)."""
    N, C, H, W = x.shape
    NC = N * C
    x3 = x.reshape(NC, H, W)

    TH, vmem_limit = _pick_strip_height(H, W, jnp.dtype(x.dtype).itemsize)
    n_strips = -(-H // TH)

    # Small halo side-array: HALO rows above + HALO rows below every strip,
    # zeroed where they fall outside the image (static indices -> cheap gather,
    # ~2*HALO/TH extra HBM traffic instead of transposing / padding the input).
    offs = np.concatenate([np.arange(-HALO, 0), np.arange(TH, TH + HALO)])
    rows = np.arange(n_strips)[:, None] * TH + offs[None, :]       # (S, 2*HALO)
    valid = ((rows >= 0) & (rows < H)).reshape(1, n_strips, 2 * HALO, 1)
    rows_c = np.clip(rows, 0, H - 1).reshape(-1).astype(np.int32)
    halo = jnp.take(x3, jnp.asarray(rows_c), axis=1)
    halo = halo.reshape(NC, n_strips, 2 * HALO, W)
    halo = jnp.where(jnp.asarray(valid), halo, jnp.zeros((), x.dtype))

    kernel = functools.partial(_filter_high_kernel, img_h=H)
    out3 = pl.pallas_call(
        kernel,
        out_shape=jax.ShapeDtypeStruct((NC, H, W), x.dtype),
        grid_spec=pltpu.PrefetchScalarGridSpec(
            num_scalar_prefetch=0,
            grid=(NC, n_strips),
            in_specs=[
                pl.BlockSpec((None, TH, W), lambda nc, i: (nc, i, 0)),
                pl.BlockSpec((None, None, 2 * HALO, W), lambda nc, i: (nc, i, 0, 0)),
            ],
            out_specs=pl.BlockSpec((None, TH, W), lambda nc, i: (nc, i, 0)),
            scratch_shapes=[pltpu.VMEM((TH + 2 * HALO, W), jnp.float32)],
        ),
        compiler_params=pltpu.CompilerParams(
            dimension_semantics=("parallel", "parallel"),
            vmem_limit_bytes=vmem_limit,
        ),
    )(x3, halo)

    return out3.reshape(N, C, H, W)


def _filter_high_ref(x):
    """Pure-JAX reference (matches the PyTorch module defaults)."""
    def avgpool(v):
        s = lax.reduce_window(
            v, 0.0, lax.add,
            window_dimensions=(1, 1, K, K),
            window_strides=(1, 1, 1, 1),
            padding=[(0, 0), (0, 0), (PAD, PAD), (PAD, PAD)])
        return s / float(K * K)
    y = avgpool(x)
    return 0.5 + 0.5 * (y - avgpool(y))


if __name__ == "__main__":
    key = jax.random.PRNGKey(0)
    x = jax.random.uniform(key, (2, 4, 16, 16), dtype=jnp.float32)

    out = jax.block_until_ready(filter_high(x))

    ref = _filter_high_ref(x)
    assert out.shape == ref.shape and out.dtype == ref.dtype
    assert jnp.allclose(out, ref, atol=1e-5, rtol=1e-5)
    print("KERNEL_OK")
</pallas_src>

<mosaic_0001>
module attributes {stable_mosaic.version = 11 : i64} {
  func.func @_filter_high_kernel(%arg0: i32, %arg1: i32, %arg2: memref<1x16x16xf32, #tpu.memory_space<vmem>>, %arg3: memref<1x1x16x16xf32, #tpu.memory_space<vmem>>, %arg4: memref<1x16x16xf32, #tpu.memory_space<vmem>>, %arg5: memref<32x16xf32, #tpu.memory_space<vmem>>) attributes {dimension_semantics = [#tpu.dimension_semantics<parallel>, #tpu.dimension_semantics<parallel>], iteration_bounds = array<i64: 8, 1>, scalar_prefetch = 0 : i64, scratch_operands = 1 : i64, tpu.core_type = #tpu.core_type<tc>, window_params = [{transform_indices = @transform_0, window_bounds = array<i64: 1, 16, 16>}, {transform_indices = @transform_1, window_bounds = array<i64: 1, 1, 16, 16>}, {transform_indices = @transform_2, window_bounds = array<i64: 1, 16, 16>}]} {
    %c16_i32 = arith.constant 16 : i32
    %0 = arith.muli %arg1, %c16_i32 : i32
    %c0 = arith.constant 0 : index
    %c0_0 = arith.constant 0 : index
    %c0_1 = arith.constant 0 : index
    %1 = vector.load %arg2[%c0, %c0_0, %c0_1] : memref<1x16x16xf32, #tpu.memory_space<vmem>>, vector<1x16x16xf32>
    %2 = vector.shape_cast %1 : vector<1x16x16xf32> to vector<16x16xf32>
    %c0_2 = arith.constant 0 : index
    %c0_3 = arith.constant 0 : index
    %c0_4 = arith.constant 0 : index
    %c0_5 = arith.constant 0 : index
    %3 = vector.load %arg3[%c0_2, %c0_3, %c0_4, %c0_5] : memref<1x1x16x16xf32, #tpu.memory_space<vmem>>, vector<1x1x8x16xf32>
    %4 = vector.shape_cast %3 : vector<1x1x8x16xf32> to vector<8x16xf32>
    %c0_6 = arith.constant 0 : index
    %c0_7 = arith.constant 0 : index
    %5 = vector.load %arg5[%c0_6, %c0_7] : memref<32x16xf32, #tpu.memory_space<vmem>>, vector<8x16xf32>
    tpu.vector_store %arg5[%c0_6, %c0_7], %4 {strides = array<i32>} : memref<32x16xf32, #tpu.memory_space<vmem>>, vector<8x16xf32>,
    %c8 = arith.constant 8 : index
    %c0_8 = arith.constant 0 : index
    %6 = vector.load %arg5[%c8, %c0_8] : memref<32x16xf32, #tpu.memory_space<vmem>>, vector<16x16xf32>
    tpu.vector_store %arg5[%c8, %c0_8], %2 {strides = array<i32>} : memref<32x16xf32, #tpu.memory_space<vmem>>, vector<16x16xf32>,
    %c0_9 = arith.constant 0 : index
    %c0_10 = arith.constant 0 : index
    %c8_11 = arith.constant 8 : index
    %c0_12 = arith.constant 0 : index
    %7 = vector.load %arg3[%c0_9, %c0_10, %c8_11, %c0_12] : memref<1x1x16x16xf32, #tpu.memory_space<vmem>>, vector<1x1x8x16xf32>
    %8 = vector.shape_cast %7 : vector<1x1x8x16xf32> to vector<8x16xf32>
    %c24 = arith.constant 24 : index
    %c0_13 = arith.constant 0 : index
    %9 = vector.load %arg5[%c24, %c0_13] : memref<32x16xf32, #tpu.memory_space<vmem>>, vector<8x16xf32>
    tpu.vector_store %arg5[%c24, %c0_13], %8 {strides = array<i32>} : memref<32x16xf32, #tpu.memory_space<vmem>>, vector<8x16xf32>,
    %c0_14 = arith.constant 0 : index
    %c0_15 = arith.constant 0 : index
    %10 = vector.load %arg5[%c0_14, %c0_15] : memref<32x16xf32, #tpu.memory_space<vmem>>, vector<32x16xf32>
    %11 = tpu.iota {dimensions = array<i32: 1>} : vector<32x16xi32>
    %c15_i32 = arith.constant 15 : i32
    %12 = vector.broadcast %c15_i32 : i32 to vector<32x16xi32>
    %13 = arith.cmpi slt, %11, %12 : vector<32x16xi32>
    %c1_i32 = arith.constant 1 : i32
    %14 = vector.broadcast %c1_i32 : i32 to vector<32x16xi32>
    %15 = arith.cmpi sge, %11, %14 : vector<32x16xi32>
    %c14_i32 = arith.constant 14 : i32
    %16 = vector.broadcast %c14_i32 : i32 to vector<32x16xi32>
    %17 = arith.cmpi slt, %11, %16 : vector<32x16xi32>
    %c2_i32 = arith.constant 2 : i32
    %18 = vector.broadcast %c2_i32 : i32 to vector<32x16xi32>
    %19 = arith.cmpi sge, %11, %18 : vector<32x16xi32>
    %c15_i32_16 = arith.constant 15 : i32
    %20 = tpu.dynamic_rotate %10 by %c15_i32_16 dim 1 : vector<32x16xf32>, i32 -> vector<32x16xf32>
    %cst = arith.constant 0.000000e+00 : f32
    %21 = vector.broadcast %cst : f32 to vector<32x16xf32>
    %22 = arith.select %13, %20, %21 : vector<32x16xi1>, vector<32x16xf32>
    %c1_i32_17 = arith.constant 1 : i32
    %23 = tpu.dynamic_rotate %10 by %c1_i32_17 dim 1 : vector<32x16xf32>, i32 -> vector<32x16xf32>
    %cst_18 = arith.constant 0.000000e+00 : f32
    %24 = vector.broadcast %cst_18 : f32 to vector<32x16xf32>
    %25 = arith.select %15, %23, %24 : vector<32x16xi1>, vector<32x16xf32>
    %c14_i32_19 = arith.constant 14 : i32
    %26 = tpu.dynamic_rotate %10 by %c14_i32_19 dim 1 : vector<32x16xf32>, i32 -> vector<32x16xf32>
    %cst_20 = arith.constant 0.000000e+00 : f32
    %27 = vector.broadcast %cst_20 : f32 to vector<32x16xf32>
    %28 = arith.select %17, %26, %27 : vector<32x16xi1>, vector<32x16xf32>
    %c2_i32_21 = arith.constant 2 : i32
    %29 = tpu.dynamic_rotate %10 by %c2_i32_21 dim 1 : vector<32x16xf32>, i32 -> vector<32x16xf32>
    %cst_22 = arith.constant 0.000000e+00 : f32
    %30 = vector.broadcast %cst_22 : f32 to vector<32x16xf32>
    %31 = arith.select %19, %29, %30 : vector<32x16xi1>, vector<32x16xf32>
    %32 = arith.addf %10, %22 : vector<32x16xf32>
    %33 = arith.addf %25, %28 : vector<32x16xf32>
    %34 = arith.addf %32, %33 : vector<32x16xf32>
    %35 = arith.addf %34, %31 : vector<32x16xf32>
    %c31_i32 = arith.constant 31 : i32
    %36 = tpu.dynamic_rotate %35 by %c31_i32 dim 0 : vector<32x16xf32>, i32 -> vector<32x16xf32>
    %c1_i32_23 = arith.constant 1 : i32
    %37 = tpu.dynamic_rotate %35 by %c1_i32_23 dim 0 : vector<32x16xf32>, i32 -> vector<32x16xf32>
    %c30_i32 = arith.constant 30 : i32
    %38 = tpu.dynamic_rotate %35 by %c30_i32 dim 0 : vector<32x16xf32>, i32 -> vector<32x16xf32>
    %c2_i32_24 = arith.constant 2 : i32
    %39 = tpu.dynamic_rotate %35 by %c2_i32_24 dim 0 : vector<32x16xf32>, i32 -> vector<32x16xf32>
    %40 = arith.addf %35, %36 : vector<32x16xf32>
    %41 = arith.addf %37, %38 : vector<32x16xf32>
    %42 = arith.addf %40, %41 : vector<32x16xf32>
    %43 = arith.addf %42, %39 : vector<32x16xf32>
    %44 = tpu.iota {dimensions = array<i32: 0>} : vector<32x16xi32>
    %c8_i32 = arith.constant 8 : i32
    %45 = arith.subi %0, %c8_i32 : i32
    %46 = vector.broadcast %45 : i32 to vector<32x16xi32>
    %47 = arith.addi %44, %46 : vector<32x16xi32>
    %c0_i32 = arith.constant 0 : i32
    %48 = vector.broadcast %c0_i32 : i32 to vector<32x16xi32>
    %49 = arith.cmpi sge, %47, %48 : vector<32x16xi32>
    %c16_i32_25 = arith.constant 16 : i32
    %50 = vector.broadcast %c16_i32_25 : i32 to vector<32x16xi32>
    %51 = arith.cmpi slt, %47, %50 : vector<32x16xi32>
    %52 = arith.andi %49, %51 : vector<32x16xi1>
    %cst_26 = arith.constant 0.000000e+00 : f32
    %53 = vector.broadcast %cst_26 : f32 to vector<32x16xf32>
    %54 = arith.select %52, %43, %53 : vector<32x16xi1>, vector<32x16xf32>
    %c15_i32_27 = arith.constant 15 : i32
    %55 = tpu.dynamic_rotate %54 by %c15_i32_27 dim 1 : vector<32x16xf32>, i32 -> vector<32x16xf32>
    %cst_28 = arith.constant 0.000000e+00 : f32
    %56 = vector.broadcast %cst_28 : f32 to vector<32x16xf32>
    %57 = arith.select %13, %55, %56 : vector<32x16xi1>, vector<32x16xf32>
    %c1_i32_29 = arith.constant 1 : i32
    %58 = tpu.dynamic_rotate %54 by %c1_i32_29 dim 1 : vector<32x16xf32>, i32 -> vector<32x16xf32>
    %cst_30 = arith.constant 0.000000e+00 : f32
    %59 = vector.broadcast %cst_30 : f32 to vector<32x16xf32>
    %60 = arith.select %15, %58, %59 : vector<32x16xi1>, vector<32x16xf32>
    %c14_i32_31 = arith.constant 14 : i32
    %61 = tpu.dynamic_rotate %54 by %c14_i32_31 dim 1 : vector<32x16xf32>, i32 -> vector<32x16xf32>
    %cst_32 = arith.constant 0.000000e+00 : f32
    %62 = vector.broadcast %cst_32 : f32 to vector<32x16xf32>
    %63 = arith.select %17, %61, %62 : vector<32x16xi1>, vector<32x16xf32>
    %c2_i32_33 = arith.constant 2 : i32
    %64 = tpu.dynamic_rotate %54 by %c2_i32_33 dim 1 : vector<32x16xf32>, i32 -> vector<32x16xf32>
    %cst_34 = arith.constant 0.000000e+00 : f32
    %65 = vector.broadcast %cst_34 : f32 to vector<32x16xf32>
    %66 = arith.select %19, %64, %65 : vector<32x16xi1>, vector<32x16xf32>
    %67 = arith.addf %54, %57 : vector<32x16xf32>
    %68 = arith.addf %60, %63 : vector<32x16xf32>
    %69 = arith.addf %67, %68 : vector<32x16xf32>
    %70 = arith.addf %69, %66 : vector<32x16xf32>
    %c31_i32_35 = arith.constant 31 : i32
    %71 = tpu.dynamic_rotate %70 by %c31_i32_35 dim 0 : vector<32x16xf32>, i32 -> vector<32x16xf32>
    %c1_i32_36 = arith.constant 1 : i32
    %72 = tpu.dynamic_rotate %70 by %c1_i32_36 dim 0 : vector<32x16xf32>, i32 -> vector<32x16xf32>
    %c30_i32_37 = arith.constant 30 : i32
    %73 = tpu.dynamic_rotate %70 by %c30_i32_37 dim 0 : vector<32x16xf32>, i32 -> vector<32x16xf32>
    %c2_i32_38 = arith.constant 2 : i32
    %74 = tpu.dynamic_rotate %70 by %c2_i32_38 dim 0 : vector<32x16xf32>, i32 -> vector<32x16xf32>
    %75 = arith.addf %70, %71 : vector<32x16xf32>
    %76 = arith.addf %72, %73 : vector<32x16xf32>
    %77 = arith.addf %75, %76 : vector<32x16xf32>
    %78 = arith.addf %77, %74 : vector<32x16xf32>
    %cst_39 = arith.constant 2.000000e-02 : f32
    %79 = vector.broadcast %cst_39 : f32 to vector<32x16xf32>
    %80 = arith.mulf %79, %43 : vector<32x16xf32>
    %cst_40 = arith.constant 5.000000e-01 : f32
    %81 = vector.broadcast %cst_40 : f32 to vector<32x16xf32>
    %82 = arith.addf %81, %80 : vector<32x16xf32>
    %cst_41 = arith.constant 8.000000e-04 : f32
    %83 = vector.broadcast %cst_41 : f32 to vector<32x16xf32>
    %84 = arith.mulf %83, %78 : vector<32x16xf32>
    %85 = arith.subf %82, %84 : vector<32x16xf32>
    %86 = vector.extract_strided_slice %85 {offsets = [8, 0], sizes = [16, 16], strides = [1, 1]} : vector<32x16xf32> to vector<16x16xf32>
    %c0_42 = arith.constant 0 : index
    %c0_43 = arith.constant 0 : index
    %c0_44 = arith.constant 0 : index
    %87 = vector.load %arg4[%c0_42, %c0_43, %c0_44] : memref<1x16x16xf32, #tpu.memory_space<vmem>>, vector<1x16x16xf32>
    %88 = vector.shape_cast %87 : vector<1x16x16xf32> to vector<16x16xf32>
    %89 = vector.shape_cast %86 : vector<16x16xf32> to vector<1x16x16xf32>
    tpu.vector_store %arg4[%c0_42, %c0_43, %c0_44], %89 {strides = array<i32>} : memref<1x16x16xf32, #tpu.memory_space<vmem>>, vector<1x16x16xf32>,
    return
  }
  func.func @transform_0(%arg0: i32, %arg1: i32) -> (i32, i32, i32) {
    %c0_i32 = arith.constant 0 : i32
    %c0_i32_0 = arith.constant 0 : i32
    return %arg0, %arg1, %c0_i32 : i32, i32, i32
  }
  func.func @transform_1(%arg0: i32, %arg1: i32) -> (i32, i32, i32, i32) {
    %c0_i32 = arith.constant 0 : i32
    %c0_i32_0 = arith.constant 0 : i32
    %c0_i32_1 = arith.constant 0 : i32
    return %arg0, %arg1, %c0_i32, %c0_i32_0 : i32, i32, i32, i32
  }
  func.func @transform_2(%arg0: i32, %arg1: i32) -> (i32, i32, i32) {
    %c0_i32 = arith.constant 0 : i32
    %c0_i32_0 = arith.constant 0 : i32
    return %arg0, %arg1, %c0_i32 : i32, i32, i32
  }
}

</mosaic_0001>

<bundles_post_ra>
// kernel: tpu_custom_call.1
= control target key start
LH: loop header
LB: loop body
LE: loop exit
PB: predicated region body
PF: predicated region fallthrough
CT: control target
= control target key end

     0   :  { %7 = vsyncpa [#allocation4], 0  ;;  %s1463_s0 = inlined_call_operand.hbm [shape: f32[8,16,16], index: 0, kind: input, shape index: {}]   ;;  %s1464_s1 = inlined_call_operand.hbm [shape: f32[8,1,16,16], index: 1, kind: input, shape index: {}]   ;;  %s1465_s2 = inlined_call_operand.hbm [shape: f32[8,16,16], index: 2, kind: output, shape index: {}]  }
   0x1   :  { %9 = vsyncpa [#allocation4 + $0x1], 0 }
   0x2   :  { %10 = vsyncpa [#allocation7], 0 }
   0x3   :  { %12 = vsyncpa [#allocation7 + $0x1], 0 }
   0x4   :  { %13 = vsyncpa [#allocation5], 0 }
   0x5   :  { %15 = vsyncpa [#allocation5 + $0x1], 0  ;;  %s1014_s9 = smov 0   ;;  %s1016_s10 = smov 0  }
   0x6   :  { %s1018_s11 = smov 0   ;;  %s1020_s12 = smov 0  }
   0x7   :  { %s1022_s13 = smov 0   ;;  %s1024_s14 = smov 0  }
   0x8 LB: > { %s709_s15 = sadd.s32 4294967295, %s984_s14   ;;  %s710_s16 = sadd.s32 4294967294, %s984_s14   ;;  %s984_s14 = sphi %s1024_s14, %s21_s14   ;;  %s980_s13 = sphi %s1022_s13, %s1482_s13   ;;  %s976_s12 = sphi %s1020_s12, %s1481_s12   ;;  %s972_s11 = sphi %s1018_s11, %s1480_s11   ;;  %s968_s10 = sphi %s1016_s10, %s1479_s10   ;;  %s964_s9 = sphi %s1014_s9, %s1478_s9  }
   0x9   : > { %s33_s17 = sadd.s32 1, %s980_s13  ;;  %s42_s18 = sadd.s32 1, %s972_s11 }
   0xa   : > { %p35_p0 = scmp.ge.s32.totalorder %s33_s17, 8  ;;  %p49_p1 = scmp.ne.s32.totalorder %s972_s11, %s968_s10 }
   0xb   : > { %p50_p2 = scmp.eq.s32.totalorder %s984_s14, 0  ;;  %p55_p3 = scmp.ne.s32.totalorder %s968_s10, %s964_s9 }
   0xc   : > { %s1484_s17 = smov (%p35_p0, %s33_s17), 0  ;;  %p56_p5 = scmp.eq.s32.totalorder %s709_s15, 0 }
   0xd   : > { %p1055_p4 = por %p50_p2, %p49_p1  ;;  %s37_s20 = ssub.s32 %s980_s13, %s1484_s17 }
   0xe   : > { %p109_p6 = scmp.eq.s32.totalorder %s709_s15, 7  ;;  %p40_p7 = scmp.eq.s32.totalorder %s37_s20, 0 }
   0xf   : > { %p1061_p8 = por %p56_p5, %p55_p3  ;;  %p115_p10 = scmp.eq.s32.totalorder %s710_s16, 7 }
  0x10   : > { %p1065_p9 = por %p109_p6, %p49_p1  ;;  %p748_p12 = scmp.lt.s32.totalorder %s984_s14, 8 }
  0x11   : > { %s1469_s21 = scalar_select %p1061_p8, 1, 0 }
  0x12   : > { %s1470_s22 = scalar_select %p1065_p9, 1, 0 }
  0x13   : > { %s1070_s23 = scalar_select %p40_p7, %s972_s11, %s42_s18  }
  0x14   : > { %p1072_p11 = por %p115_p10, %p55_p3  ;;  %s1078_s25 = sand.u32 1, %s972_s11  }
  0x15   : > { %s713_s26 = sshll.u32 %s1078_s25, 4  ;;  %s728_s27 = sshll.u32 %s980_s13, 8 }
  0x16   : > { %s1471_s24 = scalar_select %p1072_p11, 1, 0 }
  0x17   : > { %s1087_s30 = scalar_lea.hbm %s1463_s0, %s728_s27  ;;  %s139_s3 = scalar_lea.vmem [#allocation3], %s713_s26 }
  0x18   : > { %s148_s4 = sshll.u32 %s139_s3, 4  ;;  %p1095_p13 = pnand %p748_p12, %p1055_p4  ;;  %s1091_s4 = int_to_ptr.vmem [resolvable:$true] %s148_s4 }
  0x19   : > { %s136_s6 = scalar_lea.sflag [#allocation4], %s1078_s25  ;;  %s838_s7 = scalar_lea.hbm %s1087_s30, 256 }
  0x1a   : > { %p839_p1 = scmp.ne.s32.totalorder %s1087_s30, %s838_s7  ;;  %p840_p2 = pneg %p1095_p13 }
  0x1b   : > { %s843_s16 = scalar_lea.hbm %s1463_s0, 2048  ;;  %p844_p4 = scmp.lt.u32.totalorder %s1087_s30, %s1463_s0 }
  0x1c   : > { %p841_p3 = pnand %p840_p2, %p839_p1  ;;  %p845_p6 = scmp.lt.u32.totalorder %s843_s16, %s838_s7 }
  0x1d   : > { %p847_p10 = scmp.lt.u32.totalorder %s838_s7, %s1087_s30 }
  0x1e   : > { %p842_p5 = pneg %p841_p3  ;;  %p846_p7 = por %p845_p6, %p844_p4 }
  0x20   : > { %p848_p12 = por %p847_p10, %p846_p7 }
  0x22   : > { %p849_p0 = pnand %p848_p12, %p842_p5 }
  0x24   : > { %852 = shalt.err (!%p849_p0)
}
  0x25   : > { %s853_s20 = scalar_lea.vmem %s1091_s4, 256  ;;  %s986_s28 = smov [#allocation3]  }
  0x26   : > { %p854_p1 = scmp.ne.s32.totalorder %s1091_s4, %s853_s20  ;;  %s858_s29 = sshll.u32 %s986_s28, 4  ;;  %s859_s29 = int_to_ptr.vmem [resolvable:$false] %s858_s29 }
  0x27   : > { %s860_s3 = scalar_lea.vmem %s859_s29, 512  ;;  %p861_p9 = scmp.lt.s32.totalorder %s1091_s4, %s859_s29 }
  0x28   : > { %p856_p3 = pnand %p854_p1, %p840_p2  ;;  %p862_p4 = scmp.lt.s32.totalorder %s860_s3, %s853_s20 }
  0x2a   : > { %p857_p11 = pneg %p856_p3  ;;  %p863_p6 = por %p862_p4, %p861_p9 }
  0x2c   : > { %p864_p7 = pnand %p863_p6, %p857_p11 }
  0x2e   : > { %867 = shalt.err (!%p864_p7)
}
  0x2f   : > { %s987_s7 = smov 128   ;;  %s988_s8 = smov 8  }
  0x30   : > { %740 = dma.hbm_to_vmem [thread:$0]  (!%p1095_p13), %s1087_s30, 256, %s1091_s4, %s136_s6, %s987_s7, %s987_s7, %s988_s8  }
  0x31   : > { %p179_p9 = scmp.lt.s32.totalorder %s984_s14, 9  ;;  %s1137_s18 = scalar_lea.hbm %s1464_s1, %s728_s27 }
  0x32   : > { %p1473_p11 = scmp.ge.s32.totalorder %s984_s14, 1  ;;  %s162_s20 = scalar_lea.vmem [#allocation6], %s713_s26 }
  0x33   : > { %s171_s28 = sshll.u32 %s162_s20, 4  ;;  %s159_s30 = scalar_lea.sflag [#allocation7], %s1078_s25  ;;  %s1147_s28 = int_to_ptr.vmem [resolvable:$true] %s171_s28 }
  0x34   : > { %p1141_p0 = pnand %p1473_p11, %p179_p9  ;;  %s868_s4 = scalar_lea.hbm %s1137_s18, 256 }
  0x35   : > { %p869_p5 = scmp.ne.s32.totalorder %s1137_s18, %s868_s4  ;;  %s873_s29 = scalar_lea.hbm %s1464_s1, 2048 }
  0x36   : > { %p874_p1 = scmp.lt.u32.totalorder %s1137_s18, %s1464_s1  ;;  %p875_p3 = scmp.lt.u32.totalorder %s873_s29, %s868_s4 }
  0x37   : > { %p871_p10 = pnand %p869_p5, %p840_p2  ;;  %p877_p6 = scmp.lt.u32.totalorder %s868_s4, %s1137_s18 }
  0x38   : > { %p876_p4 = por %p875_p3, %p874_p1 }
  0x39   : > { %p872_p12 = pneg %p871_p10 }
  0x3a   : > { %p878_p7 = por %p877_p6, %p876_p4 }
  0x3c   : > { %p879_p9 = pnand %p878_p7, %p872_p12 }
  0x3e   : > { %882 = shalt.err (!%p879_p9)
}
  0x3f   : > { %s883_s26 = scalar_lea.vmem %s1147_s28, 256  ;;  %s989_s16 = smov [#allocation6]  }
  0x40   : > { %p884_p11 = scmp.ne.s32.totalorder %s1147_s28, %s883_s26  ;;  %s888_s20 = sshll.u32 %s989_s16, 4  ;;  %s889_s20 = int_to_ptr.vmem [resolvable:$false] %s888_s20 }
  0x41   : > { %s890_s27 = scalar_lea.vmem %s889_s20, 512  ;;  %p891_p8 = scmp.lt.s32.totalorder %s1147_s28, %s889_s20 }
  0x42   : > { %p886_p5 = pnand %p884_p11, %p840_p2  ;;  %p892_p1 = scmp.lt.s32.totalorder %s890_s27, %s883_s26 }
  0x44   : > { %p887_p10 = pneg %p886_p5  ;;  %p893_p3 = por %p892_p1, %p891_p8 }
  0x46   : > { %p894_p4 = pnand %p893_p3, %p887_p10 }
  0x48   : > { %897 = shalt.err (!%p894_p4)
}
  0x49   : > { %743 = dma.hbm_to_vmem [thread:$0]  (!%p1095_p13), %s1137_s18, 256, %s1147_s28, %s159_s30, %s987_s7, %s987_s7, %s988_s8  }
  0x4a   : > { %183 = sbr.rel (%p1141_p0) target bundleno = 875 (0x36b), region = 28  ;;  %s1181_s4 = sand.u32 (!%p1141_p0), 1, %s968_s10  }
  0x4b   : > { %s1184_s6 = sshll.u32 (!%p1141_p0), %s1181_s4, 4  ;;  %s186_s5 = scalar_lea.sflag (!%p1141_p0), [#allocation4], %s1181_s4 }
  0x4c   : > { %s189_s29 = scalar_lea.vmem (!%p1141_p0), [#allocation3], %s1184_s6  ;;  %p1475_p8 = scmp.ne.s32.totalorder (!%p1141_p0), %s1469_s21, 0 }
  0x51   : > { %951 = dma.done.wait (%p1475_p8), %s186_s5, 256  }
  0x52   : > { %953 = vsyncadd (%p1475_p8), %s186_s5, 4294967040  ;;  %s195_s25 = scalar_lea.sflag [#allocation7], %s1181_s4  ;;  %s198_s7 = scalar_lea.vmem [#allocation6], %s1184_s6 }
  0x53   : > { %955 = dma.done.wait (%p1475_p8), %s195_s25, 256  }
  0x54   : > { %957 = vsyncadd (%p1475_p8), %s195_s25, 4294967040  ;;  %vm230_vm0 = vcmask 130048   ;;  %v229_v0 = vld [vmem:[%s198_s7] sm:$0xff]  ;;  %v228_v1 = vld [vmem:[%s189_s29 + $0x8] sm:$0xff]  ;;  %s990_s8 = smov 16   ;;  %vm246_vm1 = vcmask 1047680   ;;  %v240_v28 = vlaneseq }
  0x55   : > { %v227_v2 = vld [vmem:[%s189_s29] sm:$0xff]  ;;  %231 = vst.msk [vmem:[#allocation2] sm:$0xff] %vm230_vm0, %v229_v0  ;;  %233 = vst.msk [vmem:[#allocation2 + $0x10] sm:$0xff] %vm230_vm0, %v228_v1  ;;  %v234_v3 = vld [vmem:[%s198_s7 + $0x8] sm:$0xff]  ;;  %s991_s21 = smov 127   ;;  %s992_s18 = smov 113  }
  0x56   : > { %232 = vst.msk [vmem:[#allocation2 + $0x8] sm:$0xff] %vm230_vm0, %v227_v2  ;;  %235 = vst.msk [vmem:[#allocation2 + $0x18] sm:$0xff] %vm230_vm0, %v234_v3  ;;  %s993_s19 = smov 126   ;;  %s994_s28 = smov 114   ;;  %v995_v24 = vmov 0.0   ;;  %v1255_v31 = vand.u32 127, %v240_v28 }
  0x57   : > { %v1290_v61 = vshrl.u32 %v240_v28, 7  ;;  %s730_s30 = sshll.u32 %s976_s12, 8  ;;  %s223_s3 = scalar_lea.vmem [#allocation8], %s1184_s6 }
  0x58   : > { %vm244_vm2 = vcmp.lt.s32.totalorder %v1255_v31, 14  ;;  %vm242_vm3 = vcmp.lt.s32.totalorder %v1255_v31, 15  ;;  %vm243_vm4 = vcmp.ge.s32.totalorder %v1255_v31, 1  ;;  %vm245_vm5 = vcmp.ge.s32.totalorder %v1255_v31, 2  ;;  %s596_s15 = sshll.u32 %s223_s3, 4  ;;  %s1411_s20 = scalar_lea.hbm %s1465_s2, %s730_s30  ;;  %s1413_s15 = int_to_ptr.vmem [resolvable:$true] %s596_s15 }
  0x59   : > { %vm361_vm6 = vcmp.lt.s32.totalorder %v1290_v61, 7  ;;  %vm370_vm7 = vcmp.lt.s32.totalorder %v1290_v61, 1  ;;  %vm379_vm8 = vcmp.lt.s32.totalorder %v1290_v61, 6  ;;  %vm388_vm9 = vcmp.lt.s32.totalorder %v1290_v61, 2  ;;  %s581_s12 = scalar_lea.sflag [#allocation5], %s1181_s4  ;;  %s898_s27 = scalar_lea.vmem %s1413_s15, 256 }
  0x5a   : > { %p899_p13 = scmp.ne.s32.totalorder %s1413_s15, %s898_s27  ;;  %p1476_p2 = scmp.ne.s32.totalorder %s1470_s22, 0 }
  0x5b   : > { %s996_s6 = smov [#allocation8]  }
  0x5c   : > { %v1202_v4 = vld [vmem:[#allocation2] sm:$0xff]  ;;  %v1204_v5 = vld [vmem:[#allocation2 + $0x10] sm:$0xff]  ;;  %p900_p0 = pnand %p899_p13, %p1476_p2  ;;  %s902_s5 = sshll.u32 %s996_s6, 4  ;;  %s903_s5 = int_to_ptr.vmem [resolvable:$false] %s902_s5 }
  0x5d   : > { %247 = vrot.lane.b32.xlu0 %v1202_v4, %s990_s8  ;;  %253 = vrot.lane.b32.xlu1 %v1204_v5, %s990_s8  ;;  %v1210_v6 = vld [vmem:[#allocation2 + $0x8] sm:$0xff]  ;;  %v1212_v7 = vld [vmem:[#allocation2 + $0x18] sm:$0xff]  ;;  %s904_s29 = scalar_lea.vmem %s903_s5, 512  ;;  %p905_p6 = scmp.lt.s32.totalorder %s1413_s15, %s903_s5 }
  0x5e   : > { %p901_p12 = pneg %p900_p0  ;;  %p906_p7 = scmp.lt.s32.totalorder %s904_s29, %s898_s27 }
  0x60   : > { %p907_p9 = por %p906_p7, %p905_p6 }
  0x61   : > { %250 = vrot.lane.b32.xlu0 %v1210_v6, %s990_s8  ;;  %256 = vrot.lane.b32.xlu1 %v1212_v7, %s990_s8 }
  0x62   : > { %p908_p11 = pnand %p907_p9, %p901_p12 }
  0xcf   : > { %v248_v8 = vpop.permute.xlu0 %247  ;;  %v254_v9 = vpop.permute.xlu1 %253 }
  0xd0   : > { %v249_v10 = vsel %vm246_vm1, %v248_v8, %v1202_v4  ;;  %v255_v11 = vsel %vm246_vm1, %v254_v9, %v1204_v5 }
  0xd1   : > { %259 = vrot.lane.b32.xlu0 %v249_v10, %s990_s8 }
  0xd3   : > { %v251_v12 = vpop.permute.xlu0 %250  ;;  %v257_v13 = vpop.permute.xlu1 %256 }
  0xd4   : > { %v252_v14 = vsel %vm246_vm1, %v251_v12, %v1210_v6  ;;  %v258_v15 = vsel %vm246_vm1, %v257_v13, %v1212_v7 }
  0xd5   : > { %263 = vrot.lane.b32.xlu0 %v255_v11, %s990_s8  ;;  %261 = vrot.lane.b32.xlu1 %v252_v14, %s990_s8 }
  0xd9   : > { %265 = vrot.lane.b32.xlu1 %v258_v15, %s990_s8 }
 0x143   : > { %v260_v16 = vpop.permute.xlu0 %259 }
 0x144   : > { %v267_v17 = vsel %vm246_vm1, %v260_v16, %v1202_v4 }
 0x145   : > { %275 = vrot.lane.b32.xlu0 %v267_v17, %s991_s21 }
 0x147   : > { %v262_v18 = vpop.permute.xlu1 %261  ;;  %v264_v19 = vpop.permute.xlu0 %263 }
 0x148   : > { %v268_v20 = vsel %vm246_vm1, %v262_v18, %v1210_v6  ;;  %v269_v21 = vsel %vm246_vm1, %v264_v19, %v1204_v5 }
 0x149   : > { %277 = vrot.lane.b32.xlu1 %v268_v20, %s991_s21  ;;  %279 = vrot.lane.b32.xlu0 %v269_v21, %s991_s21 }
 0x14b   : > { %v266_v22 = vpop.permute.xlu1 %265 }
 0x14c   : > { %v270_v23 = vsel %vm246_vm1, %v266_v22, %v1212_v7 }
 0x14d   : > { %281 = vrot.lane.b32.xlu1 %v270_v23, %s991_s21  ;;  %291 = vrot.lane.b32.xlu0 %v267_v17, %s992_s18 }
 0x151   : > { %293 = vrot.lane.b32.xlu1 %v268_v20, %s992_s18  ;;  %295 = vrot.lane.b32.xlu0 %v269_v21, %s992_s18 }
 0x155   : > { %297 = vrot.lane.b32.xlu1 %v270_v23, %s992_s18  ;;  %307 = vrot.lane.b32.xlu0 %v267_v17, %s993_s19 }
 0x159   : > { %309 = vrot.lane.b32.xlu1 %v268_v20, %s993_s19  ;;  %311 = vrot.lane.b32.xlu0 %v269_v21, %s993_s19 }
 0x15d   : > { %313 = vrot.lane.b32.xlu1 %v270_v23, %s993_s19  ;;  %323 = vrot.lane.b32.xlu0 %v267_v17, %s994_s28 }
 0x161   : > { %325 = vrot.lane.b32.xlu1 %v268_v20, %s994_s28  ;;  %327 = vrot.lane.b32.xlu0 %v269_v21, %s994_s28 }
 0x165   : > { %329 = vrot.lane.b32.xlu1 %v270_v23, %s994_s28  ;;  %809 = vrot.lane.b32.xlu0 %v995_v24, %s990_s8 }
 0x1b7   : > { %v276_v25 = vpop.permute.xlu0 %275 }
 0x1b8   : > { %v287_v37 = vsel %vm242_vm3, %v276_v25, 0.0 }
 0x1b9   : > { %v339_v44 = vadd.f32 %v287_v37, %v1202_v4 }
 0x1bb   : > { %v278_v26 = vpop.permute.xlu1 %277  ;;  %v280_v27 = vpop.permute.xlu0 %279 }
 0x1bc   : > { %v288_v45 = vsel %vm242_vm3, %v278_v26, 0.0  ;;  %v289_v46 = vsel %vm242_vm3, %v280_v27, 0.0 }
 0x1bd   : > { %v340_v56 = vadd.f32 %v288_v45, %v1210_v6  ;;  %v341_v57 = vadd.f32 %v289_v46, %v1204_v5 }
 0x1bf   : > { %v282_v29 = vpop.permute.xlu1 %281  ;;  %v292_v30 = vpop.permute.xlu0 %291 }
 0x1c0   : > { %v303_v38 = vsel %vm243_vm4, %v292_v30, 0.0  ;;  %v290_v58 = vsel %vm242_vm3, %v282_v29, 0.0 }
 0x1c1   : > { %v342_v5 = vadd.f32 %v290_v58, %v1212_v7 }
 0x1c3   : > { %v294_v32 = vpop.permute.xlu1 %293  ;;  %v296_v33 = vpop.permute.xlu0 %295 }
 0x1c4   : > { %v304_v47 = vsel %vm243_vm4, %v294_v32, 0.0  ;;  %v305_v48 = vsel %vm243_vm4, %v296_v33, 0.0 }
 0x1c7   : > { %v298_v34 = vpop.permute.xlu1 %297  ;;  %v308_v35 = vpop.permute.xlu0 %307 }
 0x1c8   : > { %v319_v36 = vsel %vm244_vm2, %v308_v35, 0.0  ;;  %v306_v59 = vsel %vm243_vm4, %v298_v34, 0.0 }
 0x1c9   : > { %v343_v41 = vadd.f32 %v319_v36, %v303_v38 }
 0x1cb   : > { %v310_v39 = vpop.permute.xlu1 %309  ;;  %v312_v40 = vpop.permute.xlu0 %311  ;;  %v347_v54 = vadd.f32 %v343_v41, %v339_v44 }
 0x1cc   : > { %v320_v42 = vsel %vm244_vm2, %v310_v39, 0.0  ;;  %v321_v43 = vsel %vm244_vm2, %v312_v40, 0.0 }
 0x1cd   : > { %v344_v49 = vadd.f32 %v320_v42, %v304_v47  ;;  %v345_v50 = vadd.f32 %v321_v43, %v305_v48 }
 0x1cf   : > { %v314_v51 = vpop.permute.xlu1 %313  ;;  %v324_v52 = vpop.permute.xlu0 %323  ;;  %v348_v63 = vadd.f32 %v344_v49, %v340_v56  ;;  %v349_v1 = vadd.f32 %v345_v50, %v341_v57 }
 0x1d0   : > { %v322_v53 = vsel %vm244_vm2, %v314_v51, 0.0  ;;  %v335_v55 = vsel %vm245_vm5, %v324_v52, 0.0 }
 0x1d1   : > { %v351_v60 = vadd.f32 %v347_v54, %v335_v55  ;;  %v346_v62 = vadd.f32 %v322_v53, %v306_v59 }
 0x1d3   : > { %v326_v0 = vpop.permute.xlu1 %325  ;;  %v328_v2 = vpop.permute.xlu0 %327  ;;  %v366_v9 = vrot.slane %v351_v60, 7  ;;  %v350_v13 = vadd.f32 %v346_v62, %v342_v5  ;;  %v384_v28 = vrot.slane %v351_v60, 6 }
 0x1d4   : > { %v336_v3 = vsel %vm245_vm5, %v326_v0, 0.0  ;;  %v337_v4 = vsel %vm245_vm5, %v328_v2, 0.0 }
 0x1d5   : > { %v352_v6 = vadd.f32 %v348_v63, %v336_v3  ;;  %v353_v8 = vadd.f32 %v349_v1, %v337_v4 }
 0x1d7   : > { %v356_v10 = vrot.slane %v352_v6, 1  ;;  %v367_v11 = vrot.slane %v352_v6, 7  ;;  %v376_v12 = vrot.slane %v352_v6, 2  ;;  %v330_v14 = vpop.permute.xlu1 %329  ;;  %v810_v15 = vpop.permute.xlu0 %809  ;;  %v357_v17 = vrot.slane %v353_v8, 1 }
 0x1d8   : > { %v338_v16 = vsel %vm245_vm5, %v330_v14, 0.0  ;;  %v368_v7 = vrot.slane %v353_v8, 7  ;;  %v377_v19 = vrot.slane %v353_v8, 2  ;;  %v385_v21 = vrot.slane %v352_v6, 6 }
 0x1d9   : > { %v354_v18 = vadd.f32 %v350_v13, %v338_v16  ;;  %v373_v20 = vsel %vm370_vm7, %v366_v9, %v367_v11  ;;  %v363_v22 = vsel %vm361_vm6, %v356_v10, %v357_v17  ;;  %v812_v23 = vunpack.i.h.bf16 %v810_v15 }
 0x1da   : > { %v381_v26 = vsel %vm379_vm8, %v376_v12, %v377_v19  ;;  %v394_v27 = vadd.f32 %v363_v22, %v352_v6  ;;  %v811_v30 = vunpack.i.l.bf16 %v810_v15  ;;  %v386_v32 = vrot.slane %v353_v8, 6 }
 0x1db   : > { %v358_v24 = vrot.slane %v354_v18, 1  ;;  %v378_v25 = vrot.slane %v354_v18, 2  ;;  %v398_v29 = vadd.f32 %v381_v26, %v373_v20  ;;  %v372_v34 = vsel %vm370_vm7, %v367_v11, %v368_v7 }
 0x1dc   : > { %v391_v39 = vsel %vm388_vm9, %v384_v28, %v385_v21  ;;  %v445_v40 = vsel %vm246_vm1, %v812_v23, 0.0  ;;  %v436_v41 = vsel %vm246_vm1, %v811_v30, 0.0  ;;  %v390_v44 = vsel %vm388_vm9, %v385_v21, %v386_v32 }
 0x1dd   : > { %v362_v33 = vsel %vm361_vm6, %v357_v17, %v358_v24  ;;  %v380_v35 = vsel %vm379_vm8, %v377_v19, %v378_v25  ;;  %v402_v38 = vadd.f32 %v398_v29, %v394_v27  ;;  %v813_v46 = vpack.i.bf16 %v445_v40, %v436_v41 }
 0x1de   : > { %v395_v36 = vadd.f32 %v362_v33, %v353_v8  ;;  %v399_v37 = vadd.f32 %v380_v35, %v372_v34 }
 0x1df   : > { %v1319_v43 = vadd.f32 %v402_v38, %v391_v39 }
 0x1e0   : > { %v403_v42 = vadd.f32 %v399_v37, %v395_v36 }
 0x1e1   : > { %437 = vrot.lane.b32.xlu1 %v1319_v43, %s990_s8 }
 0x1e2   : > { %v1325_v45 = vadd.f32 %v403_v42, %v390_v44 }
 0x1e4   : > { %440 = vrot.lane.b32.xlu0 %v1325_v45, %s990_s8 }
 0x1e5   : > { %814 = vrot.lane.b32.xlu1 %v813_v46, %s990_s8 }
 0x253   : > { %v438_v47 = vpop.permute.xlu1 %437 }
 0x254   : > { %v439_v48 = vsel %vm246_vm1, %v438_v47, %v1319_v43 }
 0x255   : > { %448 = vrot.lane.b32.xlu0 %v439_v48, %s990_s8 }
 0x256   : > { %v441_v49 = vpop.permute.xlu0 %440 }
 0x257   : > { %v442_v50 = vsel %vm246_vm1, %v441_v49, %v1325_v45  ;;  %v815_v51 = vpop.permute.xlu1 %814 }
 0x258   : > { %450 = vrot.lane.b32.xlu1 %v442_v50, %s990_s8  ;;  %v817_v52 = vunpack.i.h.bf16 %v815_v51  ;;  %v816_v53 = vunpack.i.l.bf16 %v815_v51 }
 0x25a   : > { %v457_v54 = vsel %vm246_vm1, %v817_v52, 0.0  ;;  %v454_v55 = vsel %vm246_vm1, %v816_v53, 0.0 }
 0x25b   : > { %v818_v56 = vpack.i.bf16 %v457_v54, %v454_v55 }
 0x25d   : > { %819 = vrot.lane.b32.xlu0 %v818_v56, %s992_s18  ;;  %824 = vrot.lane.b32.xlu1 %v818_v56, %s993_s19 }
 0x261   : > { %829 = vrot.lane.b32.xlu0 %v818_v56, %s991_s21  ;;  %834 = vrot.lane.b32.xlu1 %v818_v56, %s994_s28 }
 0x2c7   : > { %v449_v57 = vpop.permute.xlu0 %448 }
 0x2c8   : > { %v455_v58 = vsel %vm246_vm1, %v449_v57, %v1319_v43 }
 0x2c9   : > { %464 = vrot.lane.b32.xlu0 %v455_v58, %s991_s21 }
 0x2ca   : > { %v451_v59 = vpop.permute.xlu1 %450 }
 0x2cb   : > { %v456_v60 = vsel %vm246_vm1, %v451_v59, %v1325_v45 }
 0x2cc   : > { %466 = vrot.lane.b32.xlu1 %v456_v60, %s991_s21 }
 0x2cd   : > { %482 = vrot.lane.b32.xlu0 %v456_v60, %s992_s18 }
 0x2cf   : > { %v820_v62 = vpop.permute.xlu0 %819  ;;  %v825_v63 = vpop.permute.xlu1 %824 }
 0x2d0   : > { %480 = vrot.lane.b32.xlu1 %v455_v58, %s992_s18  ;;  %v822_v1 = vunpack.i.h.bf16 %v820_v62  ;;  %v821_v2 = vunpack.i.l.bf16 %v820_v62  ;;  %v827_v4 = vunpack.i.h.bf16 %v825_v63  ;;  %v826_v5 = vunpack.i.l.bf16 %v825_v63 }
 0x2d1   : > { %496 = vrot.lane.b32.xlu0 %v455_v58, %s993_s19 }
 0x2d2   : > { %v493_v8 = vsel %vm243_vm4, %v822_v1, 0.0  ;;  %v490_v9 = vsel %vm243_vm4, %v821_v2, 0.0  ;;  %v509_v11 = vsel %vm244_vm2, %v827_v4, 0.0  ;;  %v506_v12 = vsel %vm244_vm2, %v826_v5, 0.0 }
 0x2d3   : > { %v830_v0 = vpop.permute.xlu0 %829  ;;  %v835_v3 = vpop.permute.xlu1 %834  ;;  %v530_v16 = vadd.f32 %v506_v12, %v490_v9  ;;  %v533_v17 = vadd.f32 %v509_v11, %v493_v8  ;;  %v570_v9 = vmul.f32 0.02, %v1319_v43  ;;  %v571_v11 = vmul.f32 0.02, %v1325_v45 }
 0x2d4   : > { %498 = vrot.lane.b32.xlu1 %v456_v60, %s993_s19  ;;  %v832_v13 = vunpack.i.h.bf16 %v830_v0  ;;  %v831_v14 = vunpack.i.l.bf16 %v830_v0  ;;  %v837_v7 = vunpack.i.h.bf16 %v835_v3  ;;  %v836_v18 = vunpack.i.l.bf16 %v835_v3 }
 0x2d5   : > { %512 = vrot.lane.b32.xlu0 %v455_v58, %s994_s28 }
 0x2d6   : > { %v477_v20 = vsel %vm242_vm3, %v832_v13, 0.0  ;;  %v474_v21 = vsel %vm242_vm3, %v831_v14, 0.0  ;;  %v525_v33 = vsel %vm245_vm5, %v837_v7, 0.0  ;;  %v522_v34 = vsel %vm245_vm5, %v836_v18, 0.0 }
 0x2d7   : > { %v534_v27 = vadd.f32 %v530_v16, %v474_v21  ;;  %v537_v28 = vadd.f32 %v533_v17, %v477_v20  ;;  %v572_v7 = vadd.f32 0.5, %v570_v9 }
 0x2d8   : > { %514 = vrot.lane.b32.xlu1 %v456_v60, %s994_s28 }
 0x2d9   : > { %v538_v42 = vadd.f32 %v534_v27, %v522_v34  ;;  %v541_v44 = vadd.f32 %v537_v28, %v525_v33 }
 0x2db   : > { %v544_v52 = vrot.slane %v541_v44, 1  ;;  %v547_v53 = vrot.slane %v538_v42, 7  ;;  %v554_v54 = vrot.slane %v541_v44, 2 }
 0x33b   : > { %v465_v6 = vpop.permute.xlu0 %464 }
 0x33c   : > { %v475_v22 = vsel %vm242_vm3, %v465_v6, 0.0 }
 0x33d   : > { %v527_v29 = vadd.f32 %v475_v22, %v1319_v43  ;;  %v573_v43 = vadd.f32 0.5, %v571_v11 }
 0x33e   : > { %v467_v10 = vpop.permute.xlu1 %466 }
 0x33f   : > { %v483_v15 = vpop.permute.xlu0 %482  ;;  %v476_v25 = vsel %vm242_vm3, %v467_v10, 0.0  ;;  %v557_v10 = vrot.slane %v538_v42, 6 }
 0x340   : > { %v492_v35 = vsel %vm243_vm4, %v483_v15, 0.0  ;;  %v528_v37 = vadd.f32 %v476_v25, %v1325_v45 }
 0x342   : > { %v481_v19 = vpop.permute.xlu1 %480 }
 0x343   : > { %v491_v23 = vsel %vm243_vm4, %v481_v19, 0.0  ;;  %v497_v24 = vpop.permute.xlu0 %496 }
 0x344   : > { %v507_v26 = vsel %vm244_vm2, %v497_v24, 0.0 }
 0x345   : > { %v531_v30 = vadd.f32 %v507_v26, %v491_v23 }
 0x346   : > { %v499_v32 = vpop.permute.xlu1 %498 }
 0x347   : > { %v508_v36 = vsel %vm244_vm2, %v499_v32, 0.0  ;;  %v535_v39 = vadd.f32 %v531_v30, %v527_v29  ;;  %v513_v40 = vpop.permute.xlu0 %512 }
 0x348   : > { %v532_v38 = vadd.f32 %v508_v36, %v492_v35  ;;  %v523_v41 = vsel %vm245_vm5, %v513_v40, 0.0 }
 0x349   : > { %v539_v46 = vadd.f32 %v535_v39, %v523_v41 }
 0x34a   : > { %v515_v47 = vpop.permute.xlu1 %514  ;;  %v536_v48 = vadd.f32 %v532_v38, %v528_v37 }
 0x34b   : > { %v524_v49 = vsel %vm245_vm5, %v515_v47, 0.0  ;;  %v548_v50 = vrot.slane %v539_v46, 7  ;;  %v542_v55 = vrot.slane %v539_v46, 1  ;;  %v552_v60 = vrot.slane %v539_v46, 2 }
 0x34c   : > { %v540_v51 = vadd.f32 %v536_v48, %v524_v49  ;;  %v558_v62 = vrot.slane %v539_v46, 6 }
 0x34d   : > { %v551_v59 = vsel %vm370_vm7, %v547_v53, %v548_v50 }
 0x34e   : > { %v543_v56 = vrot.slane %v540_v51, 1  ;;  %v549_v57 = vrot.slane %v540_v51, 7  ;;  %v553_v58 = vrot.slane %v540_v51, 2  ;;  %v559_v3 = vrot.slane %v540_v51, 6 }
 0x34f   : > { %v561_v14 = vsel %vm388_vm9, %v557_v10, %v558_v62 }
 0x350   : > { %v545_v63 = vsel %vm361_vm6, %v543_v56, %v544_v52  ;;  %v546_v31 = vsel %vm361_vm6, %v542_v55, %v543_v56  ;;  %v550_v0 = vsel %vm370_vm7, %v548_v50, %v549_v57  ;;  %v555_v1 = vsel %vm379_vm8, %v553_v58, %v554_v54 }
 0x351   : > { %v556_v2 = vsel %vm379_vm8, %v552_v60, %v553_v58  ;;  %v562_v4 = vadd.f32 %v546_v31, %v539_v46  ;;  %v563_v5 = vadd.f32 %v545_v63, %v540_v51  ;;  %v565_v8 = vadd.f32 %v555_v1, %v550_v0 }
 0x352   : > { %v564_v6 = vadd.f32 %v556_v2, %v551_v59  ;;  %v560_v15 = vsel %vm388_vm9, %v558_v62, %v559_v3 }
 0x353   : > { %v567_v13 = vadd.f32 %v565_v8, %v563_v5 }
 0x354   : > { %v566_v12 = vadd.f32 %v564_v6, %v562_v4 }
 0x355   : > { %v569_v17 = vadd.f32 %v567_v13, %v560_v15 }
 0x356   : > { %v568_v16 = vadd.f32 %v566_v12, %v561_v14 }
 0x357   : > { %v575_v19 = vmul.f32 0.0008, %v569_v17 }
 0x358   : > { %v574_v18 = vmul.f32 0.0008, %v568_v16 }
 0x359   : > { %v577_v61 = vsub.f32 %v573_v43, %v575_v19 }
 0x35a   : > { %v576_v45 = vsub.f32 %v572_v7, %v574_v18 }
 0x35b   : > { %579 = vst.msk [vmem:[%s223_s3 + $0x8] sm:$0xff] %vm230_vm0, %v577_v61 }
 0x35c   : > { %578 = vst.msk [vmem:[%s223_s3] sm:$0xff] %vm230_vm0, %v576_v45 }
 0x35d   : > { %911 = shalt.err (!%p908_p11)
}
 0x35e   : > { %s912_s25 = scalar_lea.hbm %s1411_s20, 256  ;;  %s916_s21 = scalar_lea.hbm %s1465_s2, 2048 }
 0x35f   : > { %p913_p5 = scmp.ne.s32.totalorder %s1411_s20, %s912_s25  ;;  %p917_p3 = scmp.lt.u32.totalorder %s1411_s20, %s1465_s2 }
 0x360   : > { %p918_p4 = scmp.lt.u32.totalorder %s916_s21, %s912_s25  ;;  %p920_p13 = scmp.lt.u32.totalorder %s912_s25, %s1411_s20 }
 0x361   : > { %p914_p10 = pnand %p913_p5, %p1476_p2 }
 0x362   : > { %p919_p8 = por %p918_p4, %p917_p3 }
 0x363   : > { %p915_p1 = pneg %p914_p10 }
 0x364   : > { %p921_p0 = por %p920_p13, %p919_p8 }
 0x366   : > { %p922_p12 = pnand %p921_p0, %p915_p1 }
 0x368   : > { %925 = shalt.err (!%p922_p12)
}
 0x369   : > { %s997_s28 = smov 128   ;;  %s998_s30 = smov 8  }
 0x36a   : > { %735 = dma.vmem_to_hbm [thread:$0]  (%p1476_p2), %s1413_s15, 256, %s1411_s20, %s581_s12, %s997_s28, %s997_s28, %s998_s30  }
 0x36b PF: > { %p749_p6 = scmp.ge.s32.totalorder %s984_s14, 2  ;;  %s611_s3 = sand.u32 1, %s964_s9  }
 0x36c   : > { %p1477_p7 = scmp.ne.s32.totalorder %s1471_s24, 0  ;;  %s612_s26 = scalar_lea.sflag [#allocation5], %s611_s3 }
 0x36e   : > { %p745_p9 = pnand %p749_p6, %p1477_p7 }
 0x370   : > { %959 = dma.done.wait (!%p745_p9), %s612_s26, 256  }
 0x371   : > { %961 = vsyncadd (!%p745_p9), %s612_s26, 4294967040  ;;  %s21_s14 = sadd.s32 1, %s984_s14   ;;  %s1478_s9 = smov %s968_s10 }
 0x372   : > { %p18_p11 = scmp.ge.s32.totalorder %s21_s14, 10   ;;  %s1479_s10 = smov %s972_s11 }
 0x373   : > { %s1480_s11 = smov %s1070_s23  ;;  %s1481_s12 = smov %s980_s13 }
 0x374   : > { %s1482_s13 = smov %s1484_s17  ;;  %20 = sbr.rel (!%p18_p11) target bundleno = 8 (0x8), region = 86 }
 0x37b   :  { %617 = vsyncpa [#allocation4], 1 }
 0x37c   :  { %619 = vsyncpa [#allocation4 + $0x1], 1 }
 0x37d   :  { %620 = vsyncpa [#allocation7], 1 }
 0x37e   :  { %622 = vsyncpa [#allocation7 + $0x1], 1 }
 0x37f   :  { %623 = vsyncpa [#allocation5], 1 }
 0x380   :  { %625 = vsyncpa [#allocation5 + $0x1], 1 }

</bundles_post_ra>
